<compile_context>
chip_gen: v7x
topology: tpu7x:2x2x1
jax: 0.10.0
libtpu: 0.0.40
codegen_flags: <defaults>
</compile_context>

<pallas_src>
import jax
import jax.numpy as jnp
from jax import lax
from jax.experimental import pallas as pl
from jax.experimental.pallas import tpu as pltpu


def _head_conv_kernel(x_ref, w_ref, b_ref, o_ref, pad_ref):
    # x_ref  : (Nb, Cin, H, W)      VMEM  unpadded input block (NCHW)
    # w_ref  : (Cout*Cin*9,)        SMEM  conv weights, OIHW order, flattened
    # b_ref  : (Cout,)              SMEM  bias
    # o_ref  : (Nb, Cout, H, W)     VMEM  output block (NCHW)
    # pad_ref: (Cin, H+2, W+2) f32  VMEM  scratch with the 1-pixel zero halo
    Nb, Cin, H, W = x_ref.shape
    Cout = o_ref.shape[1]

    # Hoist every SMEM scalar (weights + bias) out of the tap loops so scalar
    # loads stay off the FMA critical path.
    w = [[[[w_ref[((co * Cin + ci) * 3 + kh) * 3 + kw] for kw in range(3)]
           for kh in range(3)] for ci in range(Cin)] for co in range(Cout)]
    b = [b_ref[co] for co in range(Cout)]

    # In-kernel halo: zero the padded scratch once per step. The border stays
    # zero; the interior is overwritten per batch element below. This replaces
    # the old wrapper-side jnp.pad (and its extra HBM pass).
    pad_ref[...] = jnp.zeros_like(pad_ref)

    for nb in range(Nb):
        # Stage this element's channel planes into the scratch interior.
        for ci in range(Cin):
            pad_ref[ci, 1:H + 1, 1:W + 1] = x_ref[nb, ci].astype(jnp.float32)

        # Bias-initialised f32 accumulators, one (H, W) plane per out channel.
        accs = [jnp.full((H, W), b[co], dtype=jnp.float32) for co in range(Cout)]

        for ci in range(Cin):
            xp = pad_ref[ci]                         # (H+2, W+2), loaded once
            for kw in range(3):
                xkw = xp[:, kw:kw + W]               # lane shift (3x per ci)
                for kh in range(3):
                    patch = xkw[kh:kh + H, :]        # sublane-only slice
                    for co in range(Cout):
                        accs[co] = accs[co] + w[co][ci][kh][kw] * patch

        for co in range(Cout):
            o_ref[nb, co] = accs[co].astype(o_ref.dtype)


def _pick_batch_block(n, cin, cout, h, w, budget_bytes=4 << 20):
    """Largest batch block that keeps >=2 grid steps (v7x megacore) and fits VMEM."""
    if n <= 1:
        return 1
    best = 1
    for d in range(1, n + 1):
        if n % d != 0:
            continue
        if n // d < 2:
            continue  # keep >= 2 "parallel" steps so both v7x TCs get work
        bytes_per_step = 2 * d * (cin + cout) * h * w * 4  # double-buffered in+out
        if bytes_per_step > budget_bytes:
            continue
        best = d
    return best


def head_forward(x_nchw, weight, bias):
    """Forward pass of Head: y = Conv2d(int_ch, out_ch, kernel_size=3, padding=1)(x).

    Args:
      x_nchw: (N, Cin, H, W) input (PyTorch NCHW convention).
      weight: (Cout, Cin, 3, 3) conv weight (PyTorch OIHW layout).
      bias:   (Cout,) conv bias.
    Returns:
      (N, Cout, H, W) output (PyTorch NCHW convention).
    """
    N, Cin, H, W = x_nchw.shape
    Cout = weight.shape[0]

    nb = _pick_batch_block(N, Cin, Cout, H, W)
    grid = (N // nb,)

    # Scalar parameters -> SMEM (flattened row-major OIHW order).
    w_flat = weight.astype(jnp.float32).reshape(Cout * Cin * 9)
    b_vec = bias.astype(jnp.float32).reshape(Cout)

    return pl.pallas_call(
        _head_conv_kernel,
        out_shape=jax.ShapeDtypeStruct((N, Cout, H, W), x_nchw.dtype),
        grid_spec=pltpu.PrefetchScalarGridSpec(
            num_scalar_prefetch=0,
            grid=grid,
            in_specs=[
                pl.BlockSpec((nb, Cin, H, W), lambda n: (n, 0, 0, 0)),
                pl.BlockSpec((Cout * Cin * 9,), lambda n: (0,),
                             memory_space=pltpu.MemorySpace.SMEM),
                pl.BlockSpec((Cout,), lambda n: (0,),
                             memory_space=pltpu.MemorySpace.SMEM),
            ],
            out_specs=pl.BlockSpec((nb, Cout, H, W), lambda n: (n, 0, 0, 0)),
            scratch_shapes=[pltpu.VMEM((Cin, H + 2, W + 2), jnp.float32)],
        ),
        compiler_params=pltpu.CompilerParams(
            dimension_semantics=("parallel",)),
    )(x_nchw, w_flat, b_vec)


def _reference_conv(x_nchw, weight, bias):
    # Pure-JAX reference (NCHW, OIHW), matching PyTorch nn.Conv2d semantics.
    y = lax.conv_general_dilated(
        x_nchw, weight,
        window_strides=(1, 1),
        padding=((1, 1), (1, 1)),
        dimension_numbers=("NCHW", "OIHW", "NCHW"),
    )
    return y + bias.reshape(1, -1, 1, 1)


if __name__ == "__main__":
    key = jax.random.PRNGKey(0)
    k_x, k_w, k_b = jax.random.split(key, 3)

    N, Cin, H, W = 2, 4, 16, 16
    Cout = 1  # Head default out_ch=1

    x = jax.random.normal(k_x, (N, Cin, H, W), dtype=jnp.float32)
    # Deterministic parameter init mimicking nn.Conv2d's uniform(-bound, bound).
    fan_in = Cin * 3 * 3
    bound = 1.0 / (fan_in ** 0.5)
    weight = jax.random.uniform(k_w, (Cout, Cin, 3, 3), jnp.float32,
                                minval=-bound, maxval=bound)
    bias = jax.random.uniform(k_b, (Cout,), jnp.float32,
                              minval=-bound, maxval=bound)

    out = head_forward(x, weight, bias)
    out = jax.block_until_ready(out)

    ref = _reference_conv(x, weight, bias)
    assert out.shape == (N, Cout, H, W)
    assert jnp.allclose(out, ref, atol=1e-5, rtol=1e-5), "mismatch vs reference"

    print("KERNEL_OK")
</pallas_src>

<mosaic_0001>
module attributes {stable_mosaic.version = 11 : i64} {
  func.func @_head_conv_kernel(%arg0: i32, %arg1: memref<1x4x16x16xf32, #tpu.memory_space<vmem>>, %arg2: memref<36xf32, #tpu.memory_space<smem>>, %arg3: memref<1xf32, #tpu.memory_space<smem>>, %arg4: memref<1x1x16x16xf32, #tpu.memory_space<vmem>>, %arg5: memref<4x18x18xf32, #tpu.memory_space<vmem>>) attributes {dimension_semantics = [#tpu.dimension_semantics<parallel>], iteration_bounds = array<i64: 2>, scalar_prefetch = 0 : i64, scratch_operands = 1 : i64, tpu.core_type = #tpu.core_type<tc>, window_params = [{transform_indices = @transform_0, window_bounds = array<i64: 1, 4, 16, 16>}, {transform_indices = @transform_1, window_bounds = array<i64: 36>}, {transform_indices = @transform_2, window_bounds = array<i64: 1>}, {transform_indices = @transform_3, window_bounds = array<i64: 1, 1, 16, 16>}]} {
    %c0 = arith.constant 0 : index
    %0 = memref.load %arg2[%c0] : memref<36xf32, #tpu.memory_space<smem>>
    %c1 = arith.constant 1 : index
    %1 = memref.load %arg2[%c1] : memref<36xf32, #tpu.memory_space<smem>>
    %c2 = arith.constant 2 : index
    %2 = memref.load %arg2[%c2] : memref<36xf32, #tpu.memory_space<smem>>
    %c3 = arith.constant 3 : index
    %3 = memref.load %arg2[%c3] : memref<36xf32, #tpu.memory_space<smem>>
    %c4 = arith.constant 4 : index
    %4 = memref.load %arg2[%c4] : memref<36xf32, #tpu.memory_space<smem>>
    %c5 = arith.constant 5 : index
    %5 = memref.load %arg2[%c5] : memref<36xf32, #tpu.memory_space<smem>>
    %c6 = arith.constant 6 : index
    %6 = memref.load %arg2[%c6] : memref<36xf32, #tpu.memory_space<smem>>
    %c7 = arith.constant 7 : index
    %7 = memref.load %arg2[%c7] : memref<36xf32, #tpu.memory_space<smem>>
    %c8 = arith.constant 8 : index
    %8 = memref.load %arg2[%c8] : memref<36xf32, #tpu.memory_space<smem>>
    %c9 = arith.constant 9 : index
    %9 = memref.load %arg2[%c9] : memref<36xf32, #tpu.memory_space<smem>>
    %c10 = arith.constant 10 : index
    %10 = memref.load %arg2[%c10] : memref<36xf32, #tpu.memory_space<smem>>
    %c11 = arith.constant 11 : index
    %11 = memref.load %arg2[%c11] : memref<36xf32, #tpu.memory_space<smem>>
    %c12 = arith.constant 12 : index
    %12 = memref.load %arg2[%c12] : memref<36xf32, #tpu.memory_space<smem>>
    %c13 = arith.constant 13 : index
    %13 = memref.load %arg2[%c13] : memref<36xf32, #tpu.memory_space<smem>>
    %c14 = arith.constant 14 : index
    %14 = memref.load %arg2[%c14] : memref<36xf32, #tpu.memory_space<smem>>
    %c15 = arith.constant 15 : index
    %15 = memref.load %arg2[%c15] : memref<36xf32, #tpu.memory_space<smem>>
    %c16 = arith.constant 16 : index
    %16 = memref.load %arg2[%c16] : memref<36xf32, #tpu.memory_space<smem>>
    %c17 = arith.constant 17 : index
    %17 = memref.load %arg2[%c17] : memref<36xf32, #tpu.memory_space<smem>>
    %c18 = arith.constant 18 : index
    %18 = memref.load %arg2[%c18] : memref<36xf32, #tpu.memory_space<smem>>
    %c19 = arith.constant 19 : index
    %19 = memref.load %arg2[%c19] : memref<36xf32, #tpu.memory_space<smem>>
    %c20 = arith.constant 20 : index
    %20 = memref.load %arg2[%c20] : memref<36xf32, #tpu.memory_space<smem>>
    %c21 = arith.constant 21 : index
    %21 = memref.load %arg2[%c21] : memref<36xf32, #tpu.memory_space<smem>>
    %c22 = arith.constant 22 : index
    %22 = memref.load %arg2[%c22] : memref<36xf32, #tpu.memory_space<smem>>
    %c23 = arith.constant 23 : index
    %23 = memref.load %arg2[%c23] : memref<36xf32, #tpu.memory_space<smem>>
    %c24 = arith.constant 24 : index
    %24 = memref.load %arg2[%c24] : memref<36xf32, #tpu.memory_space<smem>>
    %c25 = arith.constant 25 : index
    %25 = memref.load %arg2[%c25] : memref<36xf32, #tpu.memory_space<smem>>
    %c26 = arith.constant 26 : index
    %26 = memref.load %arg2[%c26] : memref<36xf32, #tpu.memory_space<smem>>
    %c27 = arith.constant 27 : index
    %27 = memref.load %arg2[%c27] : memref<36xf32, #tpu.memory_space<smem>>
    %c28 = arith.constant 28 : index
    %28 = memref.load %arg2[%c28] : memref<36xf32, #tpu.memory_space<smem>>
    %c29 = arith.constant 29 : index
    %29 = memref.load %arg2[%c29] : memref<36xf32, #tpu.memory_space<smem>>
    %c30 = arith.constant 30 : index
    %30 = memref.load %arg2[%c30] : memref<36xf32, #tpu.memory_space<smem>>
    %c31 = arith.constant 31 : index
    %31 = memref.load %arg2[%c31] : memref<36xf32, #tpu.memory_space<smem>>
    %c32 = arith.constant 32 : index
    %32 = memref.load %arg2[%c32] : memref<36xf32, #tpu.memory_space<smem>>
    %c33 = arith.constant 33 : index
    %33 = memref.load %arg2[%c33] : memref<36xf32, #tpu.memory_space<smem>>
    %c34 = arith.constant 34 : index
    %34 = memref.load %arg2[%c34] : memref<36xf32, #tpu.memory_space<smem>>
    %c35 = arith.constant 35 : index
    %35 = memref.load %arg2[%c35] : memref<36xf32, #tpu.memory_space<smem>>
    %c0_0 = arith.constant 0 : index
    %36 = memref.load %arg3[%c0_0] : memref<1xf32, #tpu.memory_space<smem>>
    %cst = arith.constant 0.000000e+00 : f32
    %37 = vector.broadcast %cst : f32 to vector<4x18x18xf32>
    %c0_1 = arith.constant 0 : index
    %c0_2 = arith.constant 0 : index
    %c0_3 = arith.constant 0 : index
    %38 = vector.load %arg5[%c0_1, %c0_2, %c0_3] : memref<4x18x18xf32, #tpu.memory_space<vmem>>, vector<4x18x18xf32>
    tpu.vector_store %arg5[%c0_1, %c0_2, %c0_3], %37 {strides = array<i32>} : memref<4x18x18xf32, #tpu.memory_space<vmem>>, vector<4x18x18xf32>,
    %c0_4 = arith.constant 0 : index
    %c0_5 = arith.constant 0 : index
    %c0_6 = arith.constant 0 : index
    %c0_7 = arith.constant 0 : index
    %39 = vector.load %arg1[%c0_4, %c0_5, %c0_6, %c0_7] : memref<1x4x16x16xf32, #tpu.memory_space<vmem>>, vector<1x1x16x16xf32>
    %40 = vector.shape_cast %39 : vector<1x1x16x16xf32> to vector<16x16xf32>
    %c0_8 = arith.constant 0 : index
    %c1_9 = arith.constant 1 : index
    %c1_10 = arith.constant 1 : index
    %41 = vector.load %arg5[%c0_8, %c1_9, %c1_10] : memref<4x18x18xf32, #tpu.memory_space<vmem>>, vector<1x16x16xf32>
    %42 = vector.shape_cast %41 : vector<1x16x16xf32> to vector<16x16xf32>
    %43 = vector.shape_cast %40 : vector<16x16xf32> to vector<1x16x16xf32>
    tpu.vector_store %arg5[%c0_8, %c1_9, %c1_10], %43 {strides = array<i32>} : memref<4x18x18xf32, #tpu.memory_space<vmem>>, vector<1x16x16xf32>,
    %c0_11 = arith.constant 0 : index
    %c1_12 = arith.constant 1 : index
    %c0_13 = arith.constant 0 : index
    %c0_14 = arith.constant 0 : index
    %44 = vector.load %arg1[%c0_11, %c1_12, %c0_13, %c0_14] : memref<1x4x16x16xf32, #tpu.memory_space<vmem>>, vector<1x1x16x16xf32>
    %45 = vector.shape_cast %44 : vector<1x1x16x16xf32> to vector<16x16xf32>
    %c1_15 = arith.constant 1 : index
    %c1_16 = arith.constant 1 : index
    %c1_17 = arith.constant 1 : index
    %46 = vector.load %arg5[%c1_15, %c1_16, %c1_17] : memref<4x18x18xf32, #tpu.memory_space<vmem>>, vector<1x16x16xf32>
    %47 = vector.shape_cast %46 : vector<1x16x16xf32> to vector<16x16xf32>
    %48 = vector.shape_cast %45 : vector<16x16xf32> to vector<1x16x16xf32>
    tpu.vector_store %arg5[%c1_15, %c1_16, %c1_17], %48 {strides = array<i32>} : memref<4x18x18xf32, #tpu.memory_space<vmem>>, vector<1x16x16xf32>,
    %c0_18 = arith.constant 0 : index
    %c2_19 = arith.constant 2 : index
    %c0_20 = arith.constant 0 : index
    %c0_21 = arith.constant 0 : index
    %49 = vector.load %arg1[%c0_18, %c2_19, %c0_20, %c0_21] : memref<1x4x16x16xf32, #tpu.memory_space<vmem>>, vector<1x1x16x16xf32>
    %50 = vector.shape_cast %49 : vector<1x1x16x16xf32> to vector<16x16xf32>
    %c2_22 = arith.constant 2 : index
    %c1_23 = arith.constant 1 : index
    %c1_24 = arith.constant 1 : index
    %51 = vector.load %arg5[%c2_22, %c1_23, %c1_24] : memref<4x18x18xf32, #tpu.memory_space<vmem>>, vector<1x16x16xf32>
    %52 = vector.shape_cast %51 : vector<1x16x16xf32> to vector<16x16xf32>
    %53 = vector.shape_cast %50 : vector<16x16xf32> to vector<1x16x16xf32>
    tpu.vector_store %arg5[%c2_22, %c1_23, %c1_24], %53 {strides = array<i32>} : memref<4x18x18xf32, #tpu.memory_space<vmem>>, vector<1x16x16xf32>,
    %c0_25 = arith.constant 0 : index
    %c3_26 = arith.constant 3 : index
    %c0_27 = arith.constant 0 : index
    %c0_28 = arith.constant 0 : index
    %54 = vector.load %arg1[%c0_25, %c3_26, %c0_27, %c0_28] : memref<1x4x16x16xf32, #tpu.memory_space<vmem>>, vector<1x1x16x16xf32>
    %55 = vector.shape_cast %54 : vector<1x1x16x16xf32> to vector<16x16xf32>
    %c3_29 = arith.constant 3 : index
    %c1_30 = arith.constant 1 : index
    %c1_31 = arith.constant 1 : index
    %56 = vector.load %arg5[%c3_29, %c1_30, %c1_31] : memref<4x18x18xf32, #tpu.memory_space<vmem>>, vector<1x16x16xf32>
    %57 = vector.shape_cast %56 : vector<1x16x16xf32> to vector<16x16xf32>
    %58 = vector.shape_cast %55 : vector<16x16xf32> to vector<1x16x16xf32>
    tpu.vector_store %arg5[%c3_29, %c1_30, %c1_31], %58 {strides = array<i32>} : memref<4x18x18xf32, #tpu.memory_space<vmem>>, vector<1x16x16xf32>,
    %59 = vector.broadcast %36 : f32 to vector<16x16xf32>
    %c0_32 = arith.constant 0 : index
    %c0_33 = arith.constant 0 : index
    %c0_34 = arith.constant 0 : index
    %60 = vector.load %arg5[%c0_32, %c0_33, %c0_34] : memref<4x18x18xf32, #tpu.memory_space<vmem>>, vector<1x18x18xf32>
    %61 = vector.shape_cast %60 : vector<1x18x18xf32> to vector<18x18xf32>
    %62 = vector.extract_strided_slice %61 {offsets = [0, 0], sizes = [18, 16], strides = [1, 1]} : vector<18x18xf32> to vector<18x16xf32>
    %63 = vector.extract_strided_slice %62 {offsets = [0, 0], sizes = [16, 16], strides = [1, 1]} : vector<18x16xf32> to vector<16x16xf32>
    %64 = vector.broadcast %0 : f32 to vector<16x16xf32>
    %65 = arith.mulf %64, %63 : vector<16x16xf32>
    %66 = arith.addf %59, %65 : vector<16x16xf32>
    %67 = vector.extract_strided_slice %62 {offsets = [1, 0], sizes = [16, 16], strides = [1, 1]} : vector<18x16xf32> to vector<16x16xf32>
    %68 = vector.broadcast %3 : f32 to vector<16x16xf32>
    %69 = arith.mulf %68, %67 : vector<16x16xf32>
    %70 = arith.addf %66, %69 : vector<16x16xf32>
    %71 = vector.extract_strided_slice %62 {offsets = [2, 0], sizes = [16, 16], strides = [1, 1]} : vector<18x16xf32> to vector<16x16xf32>
    %72 = vector.broadcast %6 : f32 to vector<16x16xf32>
    %73 = arith.mulf %72, %71 : vector<16x16xf32>
    %74 = arith.addf %70, %73 : vector<16x16xf32>
    %75 = vector.extract_strided_slice %61 {offsets = [0, 1], sizes = [18, 16], strides = [1, 1]} : vector<18x18xf32> to vector<18x16xf32>
    %76 = vector.extract_strided_slice %75 {offsets = [0, 0], sizes = [16, 16], strides = [1, 1]} : vector<18x16xf32> to vector<16x16xf32>
    %77 = vector.broadcast %1 : f32 to vector<16x16xf32>
    %78 = arith.mulf %77, %76 : vector<16x16xf32>
    %79 = arith.addf %74, %78 : vector<16x16xf32>
    %80 = vector.extract_strided_slice %75 {offsets = [1, 0], sizes = [16, 16], strides = [1, 1]} : vector<18x16xf32> to vector<16x16xf32>
    %81 = vector.broadcast %4 : f32 to vector<16x16xf32>
    %82 = arith.mulf %81, %80 : vector<16x16xf32>
    %83 = arith.addf %79, %82 : vector<16x16xf32>
    %84 = vector.extract_strided_slice %75 {offsets = [2, 0], sizes = [16, 16], strides = [1, 1]} : vector<18x16xf32> to vector<16x16xf32>
    %85 = vector.broadcast %7 : f32 to vector<16x16xf32>
    %86 = arith.mulf %85, %84 : vector<16x16xf32>
    %87 = arith.addf %83, %86 : vector<16x16xf32>
    %88 = vector.extract_strided_slice %61 {offsets = [0, 2], sizes = [18, 16], strides = [1, 1]} : vector<18x18xf32> to vector<18x16xf32>
    %89 = vector.extract_strided_slice %88 {offsets = [0, 0], sizes = [16, 16], strides = [1, 1]} : vector<18x16xf32> to vector<16x16xf32>
    %90 = vector.broadcast %2 : f32 to vector<16x16xf32>
    %91 = arith.mulf %90, %89 : vector<16x16xf32>
    %92 = arith.addf %87, %91 : vector<16x16xf32>
    %93 = vector.extract_strided_slice %88 {offsets = [1, 0], sizes = [16, 16], strides = [1, 1]} : vector<18x16xf32> to vector<16x16xf32>
    %94 = vector.broadcast %5 : f32 to vector<16x16xf32>
    %95 = arith.mulf %94, %93 : vector<16x16xf32>
    %96 = arith.addf %92, %95 : vector<16x16xf32>
    %97 = vector.extract_strided_slice %88 {offsets = [2, 0], sizes = [16, 16], strides = [1, 1]} : vector<18x16xf32> to vector<16x16xf32>
    %98 = vector.broadcast %8 : f32 to vector<16x16xf32>
    %99 = arith.mulf %98, %97 : vector<16x16xf32>
    %100 = arith.addf %96, %99 : vector<16x16xf32>
    %c1_35 = arith.constant 1 : index
    %c0_36 = arith.constant 0 : index
    %c0_37 = arith.constant 0 : index
    %101 = vector.load %arg5[%c1_35, %c0_36, %c0_37] : memref<4x18x18xf32, #tpu.memory_space<vmem>>, vector<1x18x18xf32>
    %102 = vector.shape_cast %101 : vector<1x18x18xf32> to vector<18x18xf32>
    %103 = vector.extract_strided_slice %102 {offsets = [0, 0], sizes = [18, 16], strides = [1, 1]} : vector<18x18xf32> to vector<18x16xf32>
    %104 = vector.extract_strided_slice %103 {offsets = [0, 0], sizes = [16, 16], strides = [1, 1]} : vector<18x16xf32> to vector<16x16xf32>
    %105 = vector.broadcast %9 : f32 to vector<16x16xf32>
    %106 = arith.mulf %105, %104 : vector<16x16xf32>
    %107 = arith.addf %100, %106 : vector<16x16xf32>
    %108 = vector.extract_strided_slice %103 {offsets = [1, 0], sizes = [16, 16], strides = [1, 1]} : vector<18x16xf32> to vector<16x16xf32>
    %109 = vector.broadcast %12 : f32 to vector<16x16xf32>
    %110 = arith.mulf %109, %108 : vector<16x16xf32>
    %111 = arith.addf %107, %110 : vector<16x16xf32>
    %112 = vector.extract_strided_slice %103 {offsets = [2, 0], sizes = [16, 16], strides = [1, 1]} : vector<18x16xf32> to vector<16x16xf32>
    %113 = vector.broadcast %15 : f32 to vector<16x16xf32>
    %114 = arith.mulf %113, %112 : vector<16x16xf32>
    %115 = arith.addf %111, %114 : vector<16x16xf32>
    %116 = vector.extract_strided_slice %102 {offsets = [0, 1], sizes = [18, 16], strides = [1, 1]} : vector<18x18xf32> to vector<18x16xf32>
    %117 = vector.extract_strided_slice %116 {offsets = [0, 0], sizes = [16, 16], strides = [1, 1]} : vector<18x16xf32> to vector<16x16xf32>
    %118 = vector.broadcast %10 : f32 to vector<16x16xf32>
    %119 = arith.mulf %118, %117 : vector<16x16xf32>
    %120 = arith.addf %115, %119 : vector<16x16xf32>
    %121 = vector.extract_strided_slice %116 {offsets = [1, 0], sizes = [16, 16], strides = [1, 1]} : vector<18x16xf32> to vector<16x16xf32>
    %122 = vector.broadcast %13 : f32 to vector<16x16xf32>
    %123 = arith.mulf %122, %121 : vector<16x16xf32>
    %124 = arith.addf %120, %123 : vector<16x16xf32>
    %125 = vector.extract_strided_slice %116 {offsets = [2, 0], sizes = [16, 16], strides = [1, 1]} : vector<18x16xf32> to vector<16x16xf32>
    %126 = vector.broadcast %16 : f32 to vector<16x16xf32>
    %127 = arith.mulf %126, %125 : vector<16x16xf32>
    %128 = arith.addf %124, %127 : vector<16x16xf32>
    %129 = vector.extract_strided_slice %102 {offsets = [0, 2], sizes = [18, 16], strides = [1, 1]} : vector<18x18xf32> to vector<18x16xf32>
    %130 = vector.extract_strided_slice %129 {offsets = [0, 0], sizes = [16, 16], strides = [1, 1]} : vector<18x16xf32> to vector<16x16xf32>
    %131 = vector.broadcast %11 : f32 to vector<16x16xf32>
    %132 = arith.mulf %131, %130 : vector<16x16xf32>
    %133 = arith.addf %128, %132 : vector<16x16xf32>
    %134 = vector.extract_strided_slice %129 {offsets = [1, 0], sizes = [16, 16], strides = [1, 1]} : vector<18x16xf32> to vector<16x16xf32>
    %135 = vector.broadcast %14 : f32 to vector<16x16xf32>
    %136 = arith.mulf %135, %134 : vector<16x16xf32>
    %137 = arith.addf %133, %136 : vector<16x16xf32>
    %138 = vector.extract_strided_slice %129 {offsets = [2, 0], sizes = [16, 16], strides = [1, 1]} : vector<18x16xf32> to vector<16x16xf32>
    %139 = vector.broadcast %17 : f32 to vector<16x16xf32>
    %140 = arith.mulf %139, %138 : vector<16x16xf32>
    %141 = arith.addf %137, %140 : vector<16x16xf32>
    %c2_38 = arith.constant 2 : index
    %c0_39 = arith.constant 0 : index
    %c0_40 = arith.constant 0 : index
    %142 = vector.load %arg5[%c2_38, %c0_39, %c0_40] : memref<4x18x18xf32, #tpu.memory_space<vmem>>, vector<1x18x18xf32>
    %143 = vector.shape_cast %142 : vector<1x18x18xf32> to vector<18x18xf32>
    %144 = vector.extract_strided_slice %143 {offsets = [0, 0], sizes = [18, 16], strides = [1, 1]} : vector<18x18xf32> to vector<18x16xf32>
    %145 = vector.extract_strided_slice %144 {offsets = [0, 0], sizes = [16, 16], strides = [1, 1]} : vector<18x16xf32> to vector<16x16xf32>
    %146 = vector.broadcast %18 : f32 to vector<16x16xf32>
    %147 = arith.mulf %146, %145 : vector<16x16xf32>
    %148 = arith.addf %141, %147 : vector<16x16xf32>
    %149 = vector.extract_strided_slice %144 {offsets = [1, 0], sizes = [16, 16], strides = [1, 1]} : vector<18x16xf32> to vector<16x16xf32>
    %150 = vector.broadcast %21 : f32 to vector<16x16xf32>
    %151 = arith.mulf %150, %149 : vector<16x16xf32>
    %152 = arith.addf %148, %151 : vector<16x16xf32>
    %153 = vector.extract_strided_slice %144 {offsets = [2, 0], sizes = [16, 16], strides = [1, 1]} : vector<18x16xf32> to vector<16x16xf32>
    %154 = vector.broadcast %24 : f32 to vector<16x16xf32>
    %155 = arith.mulf %154, %153 : vector<16x16xf32>
    %156 = arith.addf %152, %155 : vector<16x16xf32>
    %157 = vector.extract_strided_slice %143 {offsets = [0, 1], sizes = [18, 16], strides = [1, 1]} : vector<18x18xf32> to vector<18x16xf32>
    %158 = vector.extract_strided_slice %157 {offsets = [0, 0], sizes = [16, 16], strides = [1, 1]} : vector<18x16xf32> to vector<16x16xf32>
    %159 = vector.broadcast %19 : f32 to vector<16x16xf32>
    %160 = arith.mulf %159, %158 : vector<16x16xf32>
    %161 = arith.addf %156, %160 : vector<16x16xf32>
    %162 = vector.extract_strided_slice %157 {offsets = [1, 0], sizes = [16, 16], strides = [1, 1]} : vector<18x16xf32> to vector<16x16xf32>
    %163 = vector.broadcast %22 : f32 to vector<16x16xf32>
    %164 = arith.mulf %163, %162 : vector<16x16xf32>
    %165 = arith.addf %161, %164 : vector<16x16xf32>
    %166 = vector.extract_strided_slice %157 {offsets = [2, 0], sizes = [16, 16], strides = [1, 1]} : vector<18x16xf32> to vector<16x16xf32>
    %167 = vector.broadcast %25 : f32 to vector<16x16xf32>
    %168 = arith.mulf %167, %166 : vector<16x16xf32>
    %169 = arith.addf %165, %168 : vector<16x16xf32>
    %170 = vector.extract_strided_slice %143 {offsets = [0, 2], sizes = [18, 16], strides = [1, 1]} : vector<18x18xf32> to vector<18x16xf32>
    %171 = vector.extract_strided_slice %170 {offsets = [0, 0], sizes = [16, 16], strides = [1, 1]} : vector<18x16xf32> to vector<16x16xf32>
    %172 = vector.broadcast %20 : f32 to vector<16x16xf32>
    %173 = arith.mulf %172, %171 : vector<16x16xf32>
    %174 = arith.addf %169, %173 : vector<16x16xf32>
    %175 = vector.extract_strided_slice %170 {offsets = [1, 0], sizes = [16, 16], strides = [1, 1]} : vector<18x16xf32> to vector<16x16xf32>
    %176 = vector.broadcast %23 : f32 to vector<16x16xf32>
    %177 = arith.mulf %176, %175 : vector<16x16xf32>
    %178 = arith.addf %174, %177 : vector<16x16xf32>
    %179 = vector.extract_strided_slice %170 {offsets = [2, 0], sizes = [16, 16], strides = [1, 1]} : vector<18x16xf32> to vector<16x16xf32>
    %180 = vector.broadcast %26 : f32 to vector<16x16xf32>
    %181 = arith.mulf %180, %179 : vector<16x16xf32>
    %182 = arith.addf %178, %181 : vector<16x16xf32>
    %c3_41 = arith.constant 3 : index
    %c0_42 = arith.constant 0 : index
    %c0_43 = arith.constant 0 : index
    %183 = vector.load %arg5[%c3_41, %c0_42, %c0_43] : memref<4x18x18xf32, #tpu.memory_space<vmem>>, vector<1x18x18xf32>
    %184 = vector.shape_cast %183 : vector<1x18x18xf32> to vector<18x18xf32>
    %185 = vector.extract_strided_slice %184 {offsets = [0, 0], sizes = [18, 16], strides = [1, 1]} : vector<18x18xf32> to vector<18x16xf32>
    %186 = vector.extract_strided_slice %185 {offsets = [0, 0], sizes = [16, 16], strides = [1, 1]} : vector<18x16xf32> to vector<16x16xf32>
    %187 = vector.broadcast %27 : f32 to vector<16x16xf32>
    %188 = arith.mulf %187, %186 : vector<16x16xf32>
    %189 = arith.addf %182, %188 : vector<16x16xf32>
    %190 = vector.extract_strided_slice %185 {offsets = [1, 0], sizes = [16, 16], strides = [1, 1]} : vector<18x16xf32> to vector<16x16xf32>
    %191 = vector.broadcast %30 : f32 to vector<16x16xf32>
    %192 = arith.mulf %191, %190 : vector<16x16xf32>
    %193 = arith.addf %189, %192 : vector<16x16xf32>
    %194 = vector.extract_strided_slice %185 {offsets = [2, 0], sizes = [16, 16], strides = [1, 1]} : vector<18x16xf32> to vector<16x16xf32>
    %195 = vector.broadcast %33 : f32 to vector<16x16xf32>
    %196 = arith.mulf %195, %194 : vector<16x16xf32>
    %197 = arith.addf %193, %196 : vector<16x16xf32>
    %198 = vector.extract_strided_slice %184 {offsets = [0, 1], sizes = [18, 16], strides = [1, 1]} : vector<18x18xf32> to vector<18x16xf32>
    %199 = vector.extract_strided_slice %198 {offsets = [0, 0], sizes = [16, 16], strides = [1, 1]} : vector<18x16xf32> to vector<16x16xf32>
    %200 = vector.broadcast %28 : f32 to vector<16x16xf32>
    %201 = arith.mulf %200, %199 : vector<16x16xf32>
    %202 = arith.addf %197, %201 : vector<16x16xf32>
    %203 = vector.extract_strided_slice %198 {offsets = [1, 0], sizes = [16, 16], strides = [1, 1]} : vector<18x16xf32> to vector<16x16xf32>
    %204 = vector.broadcast %31 : f32 to vector<16x16xf32>
    %205 = arith.mulf %204, %203 : vector<16x16xf32>
    %206 = arith.addf %202, %205 : vector<16x16xf32>
    %207 = vector.extract_strided_slice %198 {offsets = [2, 0], sizes = [16, 16], strides = [1, 1]} : vector<18x16xf32> to vector<16x16xf32>
    %208 = vector.broadcast %34 : f32 to vector<16x16xf32>
    %209 = arith.mulf %208, %207 : vector<16x16xf32>
    %210 = arith.addf %206, %209 : vector<16x16xf32>
    %211 = vector.extract_strided_slice %184 {offsets = [0, 2], sizes = [18, 16], strides = [1, 1]} : vector<18x18xf32> to vector<18x16xf32>
    %212 = vector.extract_strided_slice %211 {offsets = [0, 0], sizes = [16, 16], strides = [1, 1]} : vector<18x16xf32> to vector<16x16xf32>
    %213 = vector.broadcast %29 : f32 to vector<16x16xf32>
    %214 = arith.mulf %213, %212 : vector<16x16xf32>
    %215 = arith.addf %210, %214 : vector<16x16xf32>
    %216 = vector.extract_strided_slice %211 {offsets = [1, 0], sizes = [16, 16], strides = [1, 1]} : vector<18x16xf32> to vector<16x16xf32>
    %217 = vector.broadcast %32 : f32 to vector<16x16xf32>
    %218 = arith.mulf %217, %216 : vector<16x16xf32>
    %219 = arith.addf %215, %218 : vector<16x16xf32>
    %220 = vector.extract_strided_slice %211 {offsets = [2, 0], sizes = [16, 16], strides = [1, 1]} : vector<18x16xf32> to vector<16x16xf32>
    %221 = vector.broadcast %35 : f32 to vector<16x16xf32>
    %222 = arith.mulf %221, %220 : vector<16x16xf32>
    %223 = arith.addf %219, %222 : vector<16x16xf32>
    %c0_44 = arith.constant 0 : index
    %c0_45 = arith.constant 0 : index
    %c0_46 = arith.constant 0 : index
    %c0_47 = arith.constant 0 : index
    %224 = vector.load %arg4[%c0_44, %c0_45, %c0_46, %c0_47] : memref<1x1x16x16xf32, #tpu.memory_space<vmem>>, vector<1x1x16x16xf32>
    %225 = vector.shape_cast %224 : vector<1x1x16x16xf32> to vector<16x16xf32>
    %226 = vector.shape_cast %223 : vector<16x16xf32> to vector<1x1x16x16xf32>
    tpu.vector_store %arg4[%c0_44, %c0_45, %c0_46, %c0_47], %226 {strides = array<i32>} : memref<1x1x16x16xf32, #tpu.memory_space<vmem>>, vector<1x1x16x16xf32>,
    return
  }
  func.func @transform_0(%arg0: i32) -> (i32, i32, i32, i32) {
    %c0_i32 = arith.constant 0 : i32
    %c0_i32_0 = arith.constant 0 : i32
    %c0_i32_1 = arith.constant 0 : i32
    %c0_i32_2 = arith.constant 0 : i32
    return %arg0, %c0_i32, %c0_i32_0, %c0_i32_1 : i32, i32, i32, i32
  }
  func.func @transform_1(%arg0: i32) -> i32 {
    %c0_i32 = arith.constant 0 : i32
    %c0_i32_0 = arith.constant 0 : i32
    return %c0_i32 : i32
  }
  func.func @transform_2(%arg0: i32) -> i32 {
    %c0_i32 = arith.constant 0 : i32
    %c0_i32_0 = arith.constant 0 : i32
    return %c0_i32 : i32
  }
  func.func @transform_3(%arg0: i32) -> (i32, i32, i32, i32) {
    %c0_i32 = arith.constant 0 : i32
    %c0_i32_0 = arith.constant 0 : i32
    %c0_i32_1 = arith.constant 0 : i32
    %c0_i32_2 = arith.constant 0 : i32
    return %arg0, %c0_i32, %c0_i32_0, %c0_i32_1 : i32, i32, i32, i32
  }
}

</mosaic_0001>

<bundles_post_ra>
// kernel: tpu_custom_call.1
= control target key start
LH: loop header
LB: loop body
LE: loop exit
PB: predicated region body
PF: predicated region fallthrough
CT: control target
= control target key end

     0   :  { %s1952_s0 = inlined_call_operand.hbm [shape: f32[2,4,16,16], index: 0, kind: input, shape index: {}]   ;;  %s1953_s1 = inlined_call_operand.vmem [shape: f32[36], index: 1, kind: input, shape index: {}]   ;;  %s1954_s2 = inlined_call_operand.<no memory space> [shape: f32[1], index: 2, kind: input, shape index: {}]   ;;  %s1955_s3 = inlined_call_operand.hbm [shape: f32[2,1,16,16], index: 3, kind: output, shape index: {}]  }
   0x1   :  { %1965 = sst [smem:[#allocation16_spill]] %s1952_s0 }
   0x2   :  { %1966 = sst [smem:[#allocation17_spill]] %s1953_s1 }
   0x3   :  { %8 = sst [smem:[#allocation3]] %s1954_s2 }
   0x4   :  { %9 = vsyncpa [#allocation5], 0 }
   0x5   :  { %11 = vsyncpa [#allocation5 + $0x1], 0 }
   0x6   :  { %12 = vsyncpa [#allocation7], 0 }
   0x7   :  { %13 = vsyncpa [#allocation6], 0 }
   0x8   :  { %15 = vsyncpa [#allocation6 + $0x1], 0  ;;  %s1274_s14 = smov 0   ;;  %s1276_s15 = smov 0  }
   0x9   :  { %s1278_s16 = smov 0   ;;  %s1280_s17 = smov 0  }
   0xa LB: > { %1967 = sst [smem:[#allocation13_spill]] %s1230_s15  ;;  %s1295_s2 = sadd.s32 4294967295, %s1238_s17   ;;  %s1238_s17 = sphi %s1280_s17, %s1990_s17   ;;  %s1234_s16 = sphi %s1278_s16, %s1989_s16   ;;  %s1230_s15 = sphi %s1276_s15, %s1988_s15   ;;  %s1226_s14 = sphi %s1274_s14, %s1987_s14  }
   0xb   : > { %1968 = sst [smem:[#allocation14_spill]] %s1234_s16  ;;  %s999_s18 = sadd.s32 4294967294, %s1238_s17  }
   0xc   : > { %s1299_s19 = sadd.s32 1, %s1238_s17   ;;  %s28_s20 = sadd.s32 1, %s1234_s16 }
   0xd   : > { %s25_s21 = ssub.s32 %s1238_s17, %s1299_s19  ;;  %p35_p0 = scmp.ne.s32.totalorder %s1234_s16, %s1230_s15 }
   0xe   : > { %p26_p1 = scmp.eq.s32.totalorder %s25_s21, 0  ;;  %p36_p2 = scmp.eq.s32.totalorder %s1238_s17, 0 }
   0xf   : > { %p41_p3 = scmp.ne.s32.totalorder %s1230_s15, %s1226_s14  ;;  %p1957_p4 = scmp.eq.s32.totalorder %s1295_s2, 0 }
  0x10   : > { %s1311_s22 = scalar_select %p26_p1, %s1234_s16, %s28_s20  }
  0x11   : > { %p1313_p5 = por %p36_p2, %p35_p0  ;;  %p1319_p6 = por %p1957_p4, %p41_p3 }
  0x12   : > { %1969 = sst [smem:[#allocation15_spill]] %s1311_s22  ;;  %p107_p7 = scmp.eq.s32.totalorder %s1295_s2, 1 }
  0x13   : > { %s1971_s24 = scalar_select %p1319_p6, 1, 0 }
  0x14   : > { %p113_p8 = scmp.eq.s32.totalorder %s999_s18, 1  ;;  %p1000_p9 = scmp.ge.s32.totalorder %s1238_s17, 1 }
  0x15   : > { %p120_p10 = scmp.lt.s32.totalorder %s1238_s17, 3  ;;  %p1326_p11 = por %p107_p7, %p35_p0 }
  0x16   : > { %p1330_p12 = por %p113_p8, %p41_p3  ;;  %s1975_s1 = sld [smem:[#allocation17_spill]] }
  0x17   : > { %s1972_s25 = scalar_select %p1326_p11, 1, 0 }
  0x18   : > { %s1973_s26 = scalar_select %p1330_p12, 1, 0 }
  0x19   : > { %p1334_p13 = pnand %p1000_p9, %p120_p10  ;;  %p1079_p2 = scmp.lt.s32.totalorder %s1238_s17, 2 }
  0x1a   : > { %s147_s5 = sand.u32 1, %s1234_s16  }
  0x1b   : > { %p1066_p1 = pneg %p1334_p13  ;;  %p1354_p3 = pnand %p1079_p2, %p1313_p5 }
  0x1c   : > { %s133_s30 = sshll.u32 %s1975_s1, 4  ;;  %s1003_s7 = sshll.u32 %s147_s5, 6  ;;  %s134_s30 = int_to_ptr.vmem [resolvable:$true] %s133_s30 }
  0x1d   : > { %p1347_p7 = pnand %p1066_p1, %p1957_p4  ;;  %s1123_s8 = scalar_lea.vmem %s134_s30, 16 }
  0x1e   : > { %p1124_p8 = scmp.ne.s32.totalorder %s134_s30, %s1123_s8  ;;  %p1131_p12 = scmp.lt.s32.totalorder %s134_s30, %s134_s30 }
  0x1f   : > { %p1125_p9 = pneg %p1347_p7  ;;  %p1132_p11 = scmp.lt.s32.totalorder %s1123_s8, %s1123_s8 }
  0x21   : > { %p1126_p10 = pnand %p1125_p9, %p1124_p8  ;;  %p1133_p1 = por %p1132_p11, %p1131_p12 }
  0x23   : > { %p1127_p0 = pneg %p1126_p10 }
  0x25   : > { %p1134_p4 = pnand %p1133_p1, %p1127_p0 }
  0x27   : > { %1137 = shalt.err (!%p1134_p4)
}
  0x28   : > { %s1240_s9 = smov [#allocation8]   ;;  %s1056_s10 = sshll.u32 %s1238_s17, 10 }
  0x29   : > { %1069 = dma.vmem_to_smem (!%p1347_p7), %s134_s30, 16, %s1240_s9, [#allocation7]  }
  0x2a   : > { %s151_s11 = scalar_lea.vmem [#allocation4], %s1003_s7  ;;  %s1978_s0 = sld [smem:[#allocation16_spill]] }
  0x2b   : > { %s158_s12 = sshll.u32 %s151_s11, 4  ;;  %s1370_s21 = scalar_lea.sflag [#allocation5], %s147_s5  ;;  %s1368_s12 = int_to_ptr.vmem [resolvable:$true] %s158_s12 }
  0x2c   : > { %p1140_p5 = pneg %p1354_p3 }
  0x30   : > { %s1366_s20 = scalar_lea.hbm %s1978_s0, %s1056_s10  ;;  %s1143_s30 = scalar_lea.hbm %s1978_s0, 2048 }
  0x31   : > { %s1138_s23 = scalar_lea.hbm %s1366_s20, 1024  ;;  %p1144_p0 = scmp.lt.u32.totalorder %s1366_s20, %s1978_s0 }
  0x32   : > { %p1139_p4 = scmp.ne.s32.totalorder %s1366_s20, %s1138_s23  ;;  %p1145_p2 = scmp.lt.u32.totalorder %s1143_s30, %s1138_s23 }
  0x33   : > { %p1147_p8 = scmp.lt.u32.totalorder %s1138_s23, %s1366_s20 }
  0x34   : > { %p1141_p11 = pnand %p1140_p5, %p1139_p4  ;;  %p1146_p7 = por %p1145_p2, %p1144_p0 }
  0x36   : > { %p1142_p12 = pneg %p1141_p11  ;;  %p1148_p9 = por %p1147_p8, %p1146_p7 }
  0x38   : > { %p1149_p10 = pnand %p1148_p9, %p1142_p12 }
  0x3a   : > { %1152 = shalt.err (!%p1149_p10)
}
  0x3b   : > { %s1153_s5 = scalar_lea.vmem %s1368_s12, 1024  ;;  %s1241_s8 = smov [#allocation4]  }
  0x3c   : > { %p1154_p1 = scmp.ne.s32.totalorder %s1368_s12, %s1153_s5  ;;  %s1158_s9 = sshll.u32 %s1241_s8, 4  ;;  %s1159_s9 = int_to_ptr.vmem [resolvable:$false] %s1158_s9 }
  0x3d   : > { %s1160_s10 = scalar_lea.vmem %s1159_s9, 2048  ;;  %p1161_p6 = scmp.lt.s32.totalorder %s1368_s12, %s1159_s9 }
  0x3e   : > { %p1156_p4 = pnand %p1154_p1, %p1140_p5  ;;  %p1162_p0 = scmp.lt.s32.totalorder %s1160_s10, %s1153_s5 }
  0x40   : > { %p1157_p11 = pneg %p1156_p4  ;;  %p1163_p2 = por %p1162_p0, %p1161_p6 }
  0x42   : > { %p1164_p7 = pnand %p1163_p2, %p1157_p11 }
  0x44   : > { %1167 = shalt.err (!%p1164_p7)
}
  0x45   : > { %s1242_s11 = smov 128   ;;  %s1243_s13 = smov 8  }
  0x46   : > { %1073 = dma.hbm_to_vmem [thread:$0]  (!%p1354_p3), %s1366_s20, 1024, %s1368_s12, %s1370_s21, %s1242_s11, %s1242_s11, %s1243_s13  }
  0x47   : > { %170 = sbr.rel (%p1334_p13) target bundleno = 439 (0x1b7), region = 32  ;;  %s1401_s18 = sand.u32 (!%p1334_p13), 1, %s1230_s15  }
  0x48   : > { %s1007_s23 = sshll.u32 (!%p1334_p13), %s1401_s18, 6  ;;  %s173_s28 = scalar_lea.sflag (!%p1334_p13), [#allocation5], %s1401_s18 }
  0x49   : > { %s1405_s29 = scalar_lea.vmem (!%p1334_p13), [#allocation4], %s1007_s23  ;;  %p1979_p6 = scmp.ne.s32.totalorder (!%p1334_p13), %s1971_s24, 0 }
  0x4e   : > { %1213 = dma.done.wait (%p1979_p6), %s173_s28, 1024  }
  0x4f   : > { %1215 = vsyncadd (%p1979_p6), %s173_s28, 4294966272  ;;  %p1980_p3 = scmp.eq.s32.totalorder %s1295_s2, 0 }
  0x51   : > { %1217 = dma.done.wait (%p1980_p3), [#allocation7], 16   ;;  %p1981_p13 = pmov %p1980_p3 }
  0x53   : > { %1219 = vsyncadd (%p1981_p13), [#allocation7], 4294967280 }
  0x54   : > { %185 = sfence }
  0x55   : > { %v255_v0 = vld [vmem:[%s1405_s29] sm:$0xff]  ;;  %v1045_v1 = vld [vmem:[%s1405_s29 + $0x10] sm:$0xff]  ;;  %vm241_vm0 = vcmask 146432   ;;  %s1244_s27 = smov 1   ;;  %vm244_vm1 = vcmask 140288   ;;  %v256_v2 = vld [vmem:[%s1405_s29 + $0x8] sm:$0xff] }
  0x56   : > { %259 = vrot.lane.b32.xlu0 %v255_v0, %s1244_s27  ;;  %273 = vrot.lane.b32.xlu1 %v1045_v1, %s1244_s27  ;;  %v1046_v3 = vld [vmem:[%s1405_s29 + $0x18] sm:$0xff]  ;;  %v1245_v4 = vmov 0.0   ;;  %v1047_v5 = vld [vmem:[%s1405_s29 + $0x20] sm:$0xff]  ;;  %vm265_vm2 = vcmask 138248   ;;  %s1010_s24 = sld [smem:[#allocation8 + $0x1]]  ;;  %s1425_s6 = sld [smem:[#allocation8 + $0x2]] }
  0x57   : > { %242 = vst.msk [vmem:[#allocation2] sm:$0xff] %vm241_vm0, %v1245_v4  ;;  %243 = vst.msk [vmem:[#allocation2 + $0x8] sm:$0xff] %vm241_vm0, %v1245_v4  ;;  %v1048_v6 = vld [vmem:[%s1405_s29 + $0x28] sm:$0xff]  ;;  %v1049_v7 = vld [vmem:[%s1405_s29 + $0x30] sm:$0xff]  ;;  %s1427_s12 = sld [smem:[#allocation8 + $0xa]]  ;;  %s1437_s20 = sld [smem:[#allocation8 + $0xb]] }
  0x58   : > { %246 = vst.msk [vmem:[#allocation2 + $0x18] sm:$0xff] %vm241_vm0, %v1245_v4  ;;  %247 = vst.msk [vmem:[#allocation2 + $0x20] sm:$0xff] %vm241_vm0, %v1245_v4  ;;  %v1050_v8 = vld [vmem:[%s1405_s29 + $0x38] sm:$0xff]  ;;  %s1961_s21 = smov 127   ;;  %s1445_s30 = sld [smem:[#allocation8 + $0x13]]  ;;  %vm326_vm3 = vcmask 1046528  }
  0x59   : > { %249 = vst.msk [vmem:[#allocation2 + $0x30] sm:$0xff] %vm241_vm0, %v1245_v4  ;;  %250 = vst.msk [vmem:[#allocation2 + $0x38] sm:$0xff] %vm241_vm0, %v1245_v4  ;;  %s1449_s4 = sld [smem:[#allocation8 + $0x4]]  ;;  %s1451_s7 = sld [smem:[#allocation8 + $0x7]]  ;;  %vm343_vm4 = vcmask 1045504   ;;  %vm897_vm5 = vcmask 130048  }
  0x5a   : > { %252 = vst.msk [vmem:[#allocation2 + $0x48] sm:$0xff] %vm241_vm0, %v1245_v4  ;;  %253 = vst.msk [vmem:[#allocation2 + $0x50] sm:$0xff] %vm241_vm0, %v1245_v4  ;;  %261 = vrot.lane.b32.xlu0 %v256_v2, %s1244_s27  ;;  %275 = vrot.lane.b32.xlu1 %v1046_v3, %s1244_s27  ;;  %s1455_s5 = sld [smem:[#allocation8 + $0x5]]  ;;  %s1457_s8 = sld [smem:[#allocation8 + $0x8]] }
  0x5b   : > { %245 = vst.msk [vmem:[#allocation2 + $0x10] sm:$0x3] %vm244_vm1, %v1245_v4  ;;  %248 = vst.msk [vmem:[#allocation2 + $0x28] sm:$0x3] %vm244_vm1, %v1245_v4  ;;  %s1959_s9 = smov 126   ;;  %s1462_s10 = sld [smem:[#allocation8 + $0xd]] }
  0x5c   : > { %251 = vst.msk [vmem:[#allocation2 + $0x40] sm:$0x3] %vm244_vm1, %v1245_v4  ;;  %254 = vst.msk [vmem:[#allocation2 + $0x58] sm:$0x3] %vm244_vm1, %v1245_v4  ;;  %v353_v13 = vstv %s1010_s24  ;;  %v406_v18 = vstv %s1425_s6  ;;  %s1464_s11 = sld [smem:[#allocation8 + $0x10]]  ;;  %s1466_s13 = sld [smem:[#allocation8 + $0x14]] }
  0x5d   : > { %v499_v21 = vstv %s1427_s12  ;;  %s1468_s23 = sld [smem:[#allocation8 + $0xe]]  ;;  %s1471_s28 = sld [smem:[#allocation8 + $0x11]]  ;;  %v552_v29 = vstv %s1437_s20 }
  0x5e   : > { %287 = vrot.lane.b32.xlu0 %v1047_v5, %s1244_s27  ;;  %289 = vrot.lane.b32.xlu1 %v1048_v6, %s1244_s27  ;;  %s1473_s29 = sld [smem:[#allocation8 + $0x3]]  ;;  %s1480_s24 = sld [smem:[#allocation3]]  ;;  %v645_v31 = vstv %s1445_s30 }
  0x5f   : > { %s1484_s6 = sld [smem:[#allocation8 + $0x16]]  ;;  %s1486_s12 = sld [smem:[#allocation8 + $0x19]]  ;;  %v366_v37 = vstv %s1449_s4  ;;  %v386_v38 = vstv %s1451_s7 }
  0x60   : > { %s1491_s0 = sld [smem:[#allocation8]]  ;;  %s1493_s20 = sld [smem:[#allocation8 + $0xc]]  ;;  %v419_v40 = vstv %s1455_s5  ;;  %v439_v41 = vstv %s1457_s8 }
  0x61   : > { %s1501_s1 = sld [smem:[#allocation8 + $0x15]]  ;;  %s1982_s30 = smov 127   ;;  %v512_v42 = vstv %s1462_s10 }
  0x62   : > { %301 = vrot.lane.b32.xlu0 %v1049_v7, %s1244_s27  ;;  %303 = vrot.lane.b32.xlu1 %v1050_v8, %s1244_s27  ;;  %s1478_s27 = sld [smem:[#allocation8 + $0x6]]  ;;  %s1983_s22 = smov 126   ;;  %v698_v36 = vstv %s1466_s13  ;;  %v1521_v44 = vstv %s1464_s11 }
  0x63   : > { %s1506_s16 = sld [smem:[#allocation8 + $0x18]]  ;;  %s1508_s15 = sld [smem:[#allocation8 + $0x1e]]  ;;  %v1524_v45 = vstv %s1468_s23  ;;  %v1527_v46 = vstv %s1471_s28 }
  0x64   : > { %v310_v50 = vstv %s1480_s24  ;;  %v1537_v51 = vstv %s1473_s29  ;;  %s1539_s4 = sld [smem:[#allocation8 + $0x21]]  ;;  %s1041_s7 = sld [smem:[#allocation8 + $0x20]] }
  0x65   : > { %v1543_v53 = vstv %s1484_s6  ;;  %v1546_v54 = vstv %s1486_s12  ;;  %s1044_s5 = sld [smem:[#allocation8 + $0x23]]  ;;  %s1027_s8 = sld [smem:[#allocation8 + $0x12]] }
  0x66   : > { %v314_v57 = vstv %s1491_s0  ;;  %v1554_v58 = vstv %s1493_s20  ;;  %s1744_s0 = sld [smem:[#allocation8 + $0x17]]  ;;  %s1009_s10 = sshll.u32 %s1401_s18, 4 }
  0x67   : > { %v1562_v63 = vstv %s1501_s1  ;;  %s1035_s1 = sld [smem:[#allocation8 + $0x1a]]  ;;  %s203_s11 = scalar_lea.vmem [#allocation9], %s1009_s10 }
  0x68   : > { %v1549_v55 = vstv %s1478_s27  ;;  %s914_s13 = sshll.u32 %s203_s11, 4  ;;  %s1057_s23 = sshll.u32 %s1295_s2, 8  ;;  %s1903_s13 = int_to_ptr.vmem [resolvable:$true] %s914_s13 }
  0x69   : > { %v1568_v1 = vstv %s1506_s16  ;;  %v1571_v2 = vstv %s1508_s15  ;;  %s1040_s15 = sld [smem:[#allocation8 + $0x1f]]  ;;  %s1813_s16 = sld [smem:[#allocation8 + $0x1d]] }
  0x6a   : > { %s1908_s27 = scalar_lea.hbm %s1955_s3, %s1057_s23  ;;  %s901_s24 = scalar_lea.sflag [#allocation6], %s1401_s18 }
  0x6b   : > { %s1168_s6 = scalar_lea.vmem %s1903_s13, 256  ;;  %p1984_p12 = scmp.ne.s32.totalorder %s1972_s25, 0 }
  0x6c   : > { %p1169_p5 = scmp.ne.s32.totalorder %s1903_s13, %s1168_s6  ;;  %s1248_s2 = smov [#allocation9]  }
  0x6d   : > { %s1172_s12 = sshll.u32 %s1248_s2, 4  ;;  %s1173_s12 = int_to_ptr.vmem [resolvable:$false] %s1172_s12 }
  0x6e   : > { %p1170_p8 = pnand %p1169_p5, %p1984_p12  ;;  %s1174_s20 = scalar_lea.vmem %s1173_s12, 512 }
  0x6f   : > { %p1175_p10 = scmp.lt.s32.totalorder %s1903_s13, %s1173_s12  ;;  %p1176_p1 = scmp.lt.s32.totalorder %s1174_s20, %s1168_s6 }
  0x70   : > { %p1171_p9 = pneg %p1170_p8 }
  0x71   : > { %p1177_p4 = por %p1176_p1, %p1175_p10 }
  0x73   : > { %p1178_p11 = pnand %p1177_p4, %p1171_p9 }
  0xc8   : > { %v260_v9 = vpop.permute.xlu0 %259  ;;  %v274_v10 = vpop.permute.xlu1 %273 }
  0xc9   : > { %266 = vst.msk [vmem:[#allocation2 + $0x1] sm:$0xff] %vm265_vm2, %v260_v9  ;;  %280 = vst.msk [vmem:[#allocation2 + $0x19] sm:$0xff] %vm265_vm2, %v274_v10 }
  0xcc   : > { %v262_v11 = vpop.permute.xlu0 %261  ;;  %v276_v12 = vpop.permute.xlu1 %275 }
  0xcd   : > { %267 = vst.msk [vmem:[#allocation2 + $0x9] sm:$0xff] %vm265_vm2, %v262_v11  ;;  %281 = vst.msk [vmem:[#allocation2 + $0x21] sm:$0xff] %vm265_vm2, %v276_v12 }
  0xd0   : > { %v1431_v14 = vld [vmem:[#allocation2] sm:$0xff]  ;;  %v288_v15 = vpop.permute.xlu0 %287  ;;  %v290_v16 = vpop.permute.xlu1 %289  ;;  %v1442_v20 = vld [vmem:[#allocation2 + $0x18] sm:$0xff] }
  0xd1   : > { %v354_v17 = vmul.f32 %v353_v13, %v1431_v14  ;;  %294 = vst.msk [vmem:[#allocation2 + $0x31] sm:$0xff] %vm265_vm2, %v288_v15  ;;  %295 = vst.msk [vmem:[#allocation2 + $0x39] sm:$0xff] %vm265_vm2, %v290_v16  ;;  %v407_v25 = vmul.f32 %v406_v18, %v1431_v14  ;;  %v500_v26 = vmul.f32 %v499_v21, %v1442_v20 }
  0xd2   : > { %v553_v33 = vmul.f32 %v552_v29, %v1442_v20  ;;  %v367_v52 = vmul.f32 %v366_v37, %v1431_v14  ;;  %v387_v0 = vmul.f32 %v386_v38, %v1431_v14  ;;  %v420_v4 = vmul.f32 %v419_v40, %v1431_v14 }
  0xd3   : > { %358 = vrot.lane.b32.xlu0 %v354_v17, %s1961_s21  ;;  %v440_v5 = vmul.f32 %v439_v41, %v1431_v14  ;;  %v513_v6 = vmul.f32 %v512_v42, %v1442_v20 }
  0xd4   : > { %v1440_v19 = vld [vmem:[#allocation2 + $0x8] sm:$0xff]  ;;  %v302_v22 = vpop.permute.xlu0 %301  ;;  %v304_v23 = vpop.permute.xlu1 %303  ;;  %v1475_v28 = vld [vmem:[#allocation2 + $0x20] sm:$0xff]  ;;  %v1533_v49 = vld [vmem:[#allocation2 + $0x10] sm:$0x3]  ;;  %v373_v3 = vrot.slane %v367_v52, 1 }
  0xd5   : > { %v355_v24 = vmul.f32 %v353_v13, %v1440_v19  ;;  %308 = vst.msk [vmem:[#allocation2 + $0x49] sm:$0xff] %vm265_vm2, %v302_v22  ;;  %309 = vst.msk [vmem:[#allocation2 + $0x51] sm:$0xff] %vm265_vm2, %v304_v23  ;;  %v408_v27 = vmul.f32 %v406_v18, %v1440_v19  ;;  %v501_v32 = vmul.f32 %v499_v21, %v1475_v28  ;;  %v1576_v7 = vld [vmem:[#allocation2 + $0x28] sm:$0x3]  ;;  %v1590_v22 = vstv %s1539_s4 }
  0xd6   : > { %v554_v39 = vmul.f32 %v552_v29, %v1475_v28  ;;  %v368_v43 = vmul.f32 %v366_v37, %v1440_v19  ;;  %v369_v61 = vmul.f32 %v366_v37, %v1533_v49  ;;  %v388_v62 = vmul.f32 %v386_v38, %v1440_v19 }
  0xd7   : > { %360 = vrot.lane.b32.xlu1 %v355_v24, %s1961_s21  ;;  %411 = vrot.lane.b32.xlu0 %v407_v25, %s1959_s9  ;;  %v389_v9 = vmul.f32 %v386_v38, %v1533_v49  ;;  %v421_v10 = vmul.f32 %v419_v40, %v1440_v19  ;;  %v422_v11 = vmul.f32 %v419_v40, %v1533_v49  ;;  %v393_v23 = vrot.slane %v387_v0, 2 }
  0xd8   : > { %v1488_v30 = vld [vmem:[#allocation2 + $0x30] sm:$0xff]  ;;  %v1510_v35 = vld [vmem:[#allocation2 + $0x38] sm:$0xff]  ;;  %v374_v60 = vrot.slane %v368_v43, 1  ;;  %v376_v13 = vrot.slane %v369_v61, 1  ;;  %v394_v15 = vrot.slane %v388_v62, 2  ;;  %v441_v16 = vmul.f32 %v439_v41, %v1440_v19 }
  0xd9   : > { %v646_v34 = vmul.f32 %v645_v31, %v1488_v30  ;;  %v647_v47 = vmul.f32 %v645_v31, %v1510_v35  ;;  %v699_v48 = vmul.f32 %v698_v36, %v1488_v30  ;;  %v700_v8 = vmul.f32 %v698_v36, %v1510_v35 }
  0xda   : > { %v375_v12 = vsel %vm326_vm3, %v373_v3, %v374_v60  ;;  %v442_v17 = vmul.f32 %v439_v41, %v1533_v49  ;;  %v514_v18 = vmul.f32 %v512_v42, %v1475_v28  ;;  %v515_v21 = vmul.f32 %v512_v42, %v1576_v7 }
  0xdb   : > { %413 = vrot.lane.b32.xlu1 %v408_v27, %s1959_s9  ;;  %504 = vrot.lane.b32.xlu0 %v500_v26, %s1961_s21  ;;  %s1497_s9 = sld [smem:[#allocation8 + $0x1c]]  ;;  %s1499_s21 = sld [smem:[#allocation8 + $0xf]]  ;;  %v1594_v24 = vmul.f32 %v1521_v44, %v1442_v20  ;;  %v1598_v25 = vmul.f32 %v1524_v45, %v1442_v20  ;;  %v1602_v26 = vmul.f32 %v1527_v46, %v1442_v20  ;;  %v396_v27 = vrot.slane %v389_v9, 2 }
  0xdc   : > { %v427_v29 = vrot.slane %v421_v10, 1  ;;  %v429_v31 = vrot.slane %v422_v11, 1  ;;  %v426_v36 = vrot.slane %v420_v4, 1  ;;  %v447_v37 = vrot.slane %v441_v16, 2  ;;  %v1612_v40 = vld [vmem:[#allocation2 + $0x50] sm:$0xff] }
  0xdd   : > { %v449_v38 = vrot.slane %v442_v17, 2  ;;  %v519_v41 = vrot.slane %v513_v6, 1  ;;  %v520_v42 = vrot.slane %v514_v18, 1  ;;  %v522_v43 = vrot.slane %v515_v21, 1 }
  0xde   : > { %v535_v52 = vmul.f32 %v1521_v44, %v1576_v7  ;;  %v397_v61 = vsel %vm343_vm4, %v394_v15, %v396_v27  ;;  %v428_v62 = vsel %vm326_vm3, %v426_v36, %v427_v29  ;;  %v430_v0 = vsel %vm326_vm3, %v427_v29, %v429_v31 }
  0xdf   : > { %506 = vrot.lane.b32.xlu1 %v501_v32, %s1982_s30  ;;  %557 = vrot.lane.b32.xlu0 %v553_v33, %s1983_s22  ;;  %v320_v32 = vmul.f32 %v1537_v51, %v1431_v14  ;;  %v377_v33 = vsel %vm326_vm3, %v374_v60, %v376_v13  ;;  %v337_v60 = vmul.f32 %v1549_v55, %v1431_v14  ;;  %v539_v6 = vrot.slane %v1594_v24, 2 }
  0xe0   : > { %v1625_v3 = vmul.f32 %v1524_v45, %v1475_v28  ;;  %v521_v9 = vsel %vm326_vm3, %v519_v41, %v520_v42  ;;  %v1640_v10 = vsel %vm326_vm3, %v520_v42, %v522_v43  ;;  %v572_v11 = vrot.slane %v1598_v25, 1 }
  0xe1   : > { %v791_v56 = vstv %s1497_s9  ;;  %v1557_v59 = vstv %s1499_s21  ;;  %v542_v13 = vrot.slane %v535_v52, 2  ;;  %v1650_v17 = vmul.f32 %v1524_v45, %v1576_v7  ;;  %s1043_s21 = sld [smem:[#allocation8 + $0x22]]  ;;  %s1036_s9 = sld [smem:[#allocation8 + $0x1b]] }
  0xe2   : > { %v573_v16 = vrot.slane %v1625_v3, 1  ;;  %v327_v18 = vrot.slane %v320_v32, 1  ;;  %v344_v21 = vrot.slane %v337_v60, 2  ;;  %v315_v25 = vmul.f32 %v314_v57, %v1431_v14 }
  0xe3   : > { %559 = vrot.lane.b32.xlu1 %v554_v39, %s1983_s22  ;;  %650 = vrot.lane.b32.xlu0 %v646_v34, %s1982_s30  ;;  %v395_v34 = vsel %vm343_vm4, %v393_v23, %v394_v15  ;;  %v1610_v39 = vld [vmem:[#allocation2 + $0x48] sm:$0xff]  ;;  %v338_v15 = vmul.f32 %v1549_v55, %v1440_v19  ;;  %v322_v27 = vmul.f32 %v1537_v51, %v1533_v49  ;;  %v592_v45 = vrot.slane %v1602_v26, 2 }
  0xe4   : > { %v1661_v29 = vmul.f32 %v1527_v46, %v1475_v28  ;;  %v1666_v31 = vmul.f32 %v1527_v46, %v1576_v7  ;;  %v339_v14 = vmul.f32 %v1549_v55, %v1533_v49  ;;  %v1676_v36 = vmul.f32 %v1543_v53, %v1488_v30 }
  0xe5   : > { %v345_v24 = vrot.slane %v338_v15, 2  ;;  %v316_v46 = vmul.f32 %v314_v57, %v1440_v19  ;;  %v469_v42 = vmul.f32 %v1554_v58, %v1475_v28  ;;  %v470_v57 = vmul.f32 %v1554_v58, %v1576_v7 }
  0xe6   : > { %v484_v60 = vmul.f32 %v1557_v59, %v1442_v20 }
  0xe7   : > { %652 = vrot.lane.b32.xlu1 %v647_v47, %s1982_s30  ;;  %703 = vrot.lane.b32.xlu0 %v699_v48, %s1983_s22  ;;  %v446_v47 = vrot.slane %v440_v5, 2  ;;  %v534_v48 = vmul.f32 %v1521_v44, %v1475_v28  ;;  %v792_v5 = vmul.f32 %v791_v56, %v1610_v39  ;;  %v793_v44 = vmul.f32 %v791_v56, %v1612_v40 }
  0xe8   : > { %v321_v56 = vmul.f32 %v1537_v51, %v1440_v19  ;;  %v346_v32 = vsel %vm343_vm4, %v344_v21, %v345_v24  ;;  %v475_v52 = vrot.slane %v469_v42, 1  ;;  %v660_v42 = vmul.f32 %v1543_v53, %v1510_v35 }
  0xe9   : > { %v448_v4 = vsel %vm343_vm4, %v446_v47, %v447_v37  ;;  %v318_v47 = vadd.f32 %v316_v46, %v310_v50 }
  0xea   : > { %v328_v23 = vrot.slane %v321_v56, 1  ;;  %v614_v56 = vmul.f32 %v1562_v63, %v1488_v30 }
  0xeb   : > { %705 = vrot.lane.b32.xlu1 %v700_v8, %s1983_s22  ;;  %378 = vrot.lane.b32.xlu0 %v375_v12, %s1982_s30  ;;  %v450_v8 = vsel %vm343_vm4, %v447_v37, %v449_v38  ;;  %v540_v12 = vrot.slane %v534_v48, 2  ;;  %v347_v37 = vrot.slane %v339_v14, 2  ;;  %v468_v38 = vmul.f32 %v1554_v58, %v1442_v20 }
  0xec   : > { %v329_v51 = vsel %vm326_vm3, %v327_v18, %v328_v23  ;;  %v620_v21 = vrot.slane %v614_v56, 1 }
  0xed   : > { %v541_v49 = vsel %vm343_vm4, %v539_v6, %v540_v12  ;;  %v348_v43 = vsel %vm343_vm4, %v345_v24, %v347_v37  ;;  %v474_v19 = vrot.slane %v468_v38, 1  ;;  %v490_v6 = vrot.slane %v484_v60, 2 }
  0xee   : > { %v630_v24 = vmul.f32 %v1568_v1, %v1488_v30 }
  0xef   : > { %380 = vrot.lane.b32.xlu1 %v377_v33, %s1982_s30  ;;  %398 = vrot.lane.b32.xlu0 %v395_v34, %s1982_s30  ;;  %v317_v33 = vadd.f32 %v315_v25, %v310_v50  ;;  %v330_v34 = vrot.slane %v322_v27, 1  ;;  %v486_v50 = vmul.f32 %v1557_v59, %v1576_v7  ;;  %v1706_v58 = vsel %vm326_vm3, %v474_v19, %v475_v52 }
  0xf0   : > { %v574_v7 = vsel %vm326_vm3, %v572_v11, %v573_v16  ;;  %v631_v25 = vmul.f32 %v1568_v1, %v1510_v35  ;;  %v575_v27 = vrot.slane %v1650_v17, 1  ;;  %v1735_v11 = vld [vmem:[#allocation2 + $0x58] sm:$0x3]  ;;  %v636_v17 = vrot.slane %v630_v24, 2 }
  0xf1   : > { %v334_v55 = vadd.f32 %v329_v51, %v317_v33  ;;  %v331_v41 = vsel %vm326_vm3, %v328_v23, %v330_v34  ;;  %v493_v15 = vrot.slane %v486_v50, 2  ;;  %v761_v34 = vmul.f32 %v1571_v2, %v1612_v40 }
  0xf2   : > { %v637_v33 = vrot.slane %v631_v25, 2  ;;  %v576_v60 = vsel %vm326_vm3, %v573_v16, %v575_v27  ;;  %v666_v16 = vrot.slane %v660_v42, 1  ;;  %v824_v42 = vstv %s1043_s21 }
  0xf3   : > { %400 = vrot.lane.b32.xlu1 %v397_v61, %s1982_s30  ;;  %431 = vrot.lane.b32.xlu0 %v428_v62, %s1983_s22  ;;  %v1694_v48 = vadd.f32 %v346_v32, %v334_v55  ;;  %v485_v61 = vmul.f32 %v1557_v59, %v1475_v28  ;;  %v543_v62 = vsel %vm343_vm4, %v540_v12, %v542_v13 }
  0xf4   : > { %v615_v59 = vmul.f32 %v1562_v63, %v1510_v35  ;;  %v762_v55 = vmul.f32 %v1571_v2, %v1735_v11 }
  0xf6   : > { %v621_v23 = vrot.slane %v615_v59, 1 }
  0xf7   : > { %433 = vrot.lane.b32.xlu1 %v430_v0, %s1983_s22  ;;  %451 = vrot.lane.b32.xlu0 %v448_v4, %s1983_s22  ;;  %v1701_v0 = vld [vmem:[#allocation2 + $0x40] sm:$0x3]  ;;  %v335_v4 = vadd.f32 %v331_v41, %v318_v47  ;;  %v776_v41 = vmul.f32 %v1590_v22, %v1610_v39  ;;  %v778_v47 = vmul.f32 %v1590_v22, %v1735_v11 }
  0xf8   : > { %v632_v51 = vmul.f32 %v1568_v1, %v1701_v0  ;;  %v1747_v32 = vsel %vm326_vm3, %v620_v21, %v621_v23  ;;  %v593_v1 = vrot.slane %v1661_v29, 2  ;;  %v681_v26 = vmul.f32 %v1546_v54, %v1701_v0 }
  0xf9   : > { %v1712_v12 = vadd.f32 %v348_v43, %v335_v4  ;;  %v777_v43 = vmul.f32 %v1590_v22, %v1612_v40  ;;  %v785_v4 = vrot.slane %v778_v47, 2 }
  0xfa   : > { %v639_v46 = vrot.slane %v632_v51, 2  ;;  %v594_v3 = vsel %vm343_vm4, %v592_v45, %v593_v1  ;;  %v688_v25 = vrot.slane %v681_v26, 2 }
  0xfb   : > { %453 = vrot.lane.b32.xlu1 %v450_v8, %s1983_s22  ;;  %796 = vrot.lane.b32.xlu0 %v792_v5, %s1982_s30  ;;  %v477_v5 = vrot.slane %v470_v57, 1  ;;  %v491_v8 = vrot.slane %v485_v61, 2  ;;  %v769_v57 = vrot.slane %v762_v55, 1  ;;  %v665_v61 = vrot.slane %v1676_v36, 1 }
  0xfc   : > { %v1765_v29 = vsel %vm343_vm4, %v637_v33, %v639_v46  ;;  %v783_v22 = vrot.slane %v777_v43, 2 }
  0xfd   : > { %v1715_v13 = vsel %vm326_vm3, %v475_v52, %v477_v5  ;;  %v1723_v18 = vsel %vm343_vm4, %v490_v6, %v491_v8  ;;  %v782_v52 = vrot.slane %v776_v41, 2  ;;  %v680_v5 = vmul.f32 %v1546_v54, %v1510_v35 }
  0xfe   : > { %v1797_v6 = vsel %vm343_vm4, %v783_v22, %v785_v4  ;;  %v667_v59 = vsel %vm326_vm3, %v665_v61, %v666_v16  ;;  %v844_v41 = vstv %s1813_s16 }
  0xff   : > { %798 = vrot.lane.b32.xlu1 %v793_v44, %s1982_s30  ;;  %524 = vrot.lane.b32.xlu0 %v521_v9, %s1982_s30  ;;  %v616_v44 = vmul.f32 %v1562_v63, %v1701_v0  ;;  %v1728_v9 = vsel %vm343_vm4, %v491_v8, %v493_v15  ;;  %v760_v63 = vmul.f32 %v1571_v2, %v1610_v39  ;;  %v595_v2 = vrot.slane %v1666_v31, 2 }
 0x100   : > { %v679_v31 = vmul.f32 %v1546_v54, %v1488_v30  ;;  %v1794_v36 = vsel %vm343_vm4, %v782_v52, %v783_v22  ;;  %v686_v15 = vrot.slane %v680_v5, 2  ;;  %v877_v5 = vstv %s1044_s5 }
 0x101   : > { %v623_v14 = vrot.slane %v616_v44, 1  ;;  %v766_v38 = vrot.slane %v760_v63, 1  ;;  %v596_v45 = vsel %vm343_vm4, %v593_v1, %v595_v2  ;;  %v731_v44 = vstv %s1035_s1 }
 0x102   : > { %v685_v56 = vrot.slane %v679_v31, 2  ;;  %v732_v51 = vmul.f32 %v731_v44, %v1488_v30  ;;  %v733_v63 = vmul.f32 %v731_v44, %v1510_v35  ;;  %v857_v31 = vstv %s1041_s7 }
 0x103   : > { %526 = vrot.lane.b32.xlu1 %v1640_v10, %s1982_s30  ;;  %544 = vrot.lane.b32.xlu0 %v541_v49, %s1982_s30  ;;  %v1753_v37 = vsel %vm326_vm3, %v621_v23, %v623_v14  ;;  %v1756_v10 = vsel %vm343_vm4, %v636_v17, %v637_v33  ;;  %v767_v49 = vrot.slane %v761_v34, 1  ;;  %v689_v17 = vsel %vm343_vm4, %v686_v15, %v688_v25 }
 0x104   : > { %v687_v24 = vsel %vm343_vm4, %v685_v56, %v686_v15  ;;  %v738_v1 = vrot.slane %v732_v51, 2  ;;  %v739_v46 = vrot.slane %v733_v63, 2  ;;  %v858_v26 = vmul.f32 %v857_v31, %v1610_v39 }
 0x105   : > { %v1775_v19 = vsel %vm326_vm3, %v766_v38, %v767_v49  ;;  %v1788_v50 = vsel %vm326_vm3, %v767_v49, %v769_v57  ;;  %v734_v38 = vmul.f32 %v731_v44, %v1701_v0  ;;  %v804_v49 = vstv %s1040_s15 }
 0x106   : > { %v740_v43 = vsel %vm343_vm4, %v738_v1, %v739_v46  ;;  %v805_v2 = vmul.f32 %v804_v49, %v1610_v39  ;;  %v806_v57 = vmul.f32 %v804_v49, %v1612_v40  ;;  %v807_v52 = vmul.f32 %v804_v49, %v1735_v11 }
 0x107   : > { %546 = vrot.lane.b32.xlu1 %v543_v62, %s1982_s30  ;;  %577 = vrot.lane.b32.xlu0 %v574_v7, %s1983_s22  ;;  %v661_v62 = vmul.f32 %v1543_v53, %v1701_v0  ;;  %v711_v53 = vstv %s1744_s0  ;;  %v741_v47 = vrot.slane %v734_v38, 2  ;;  %v878_v44 = vmul.f32 %v877_v5, %v1610_v39 }
 0x108   : > { %v712_v7 = vmul.f32 %v711_v53, %v1488_v30  ;;  %v713_v21 = vmul.f32 %v711_v53, %v1510_v35  ;;  %v714_v54 = vmul.f32 %v711_v53, %v1701_v0  ;;  %v845_v0 = vmul.f32 %v844_v41, %v1610_v39 }
 0x109   : > { %v668_v8 = vrot.slane %v661_v62, 1  ;;  %v742_v61 = vsel %vm343_vm4, %v739_v46, %v741_v47  ;;  %v811_v22 = vrot.slane %v805_v2, 1  ;;  %v812_v4 = vrot.slane %v806_v57, 1 }
 0x10a   : > { %v718_v27 = vrot.slane %v712_v7, 1  ;;  %v719_v14 = vrot.slane %v713_v21, 1  ;;  %v721_v33 = vrot.slane %v714_v54, 1  ;;  %v826_v62 = vmul.f32 %v824_v42, %v1612_v40 }
 0x10b   : > { %579 = vrot.lane.b32.xlu1 %v576_v60, %s1983_s22  ;;  %597 = vrot.lane.b32.xlu0 %v594_v3, %s1983_s22  ;;  %v669_v23 = vsel %vm326_vm3, %v666_v16, %v668_v8  ;;  %v825_v60 = vmul.f32 %v824_v42, %v1610_v39  ;;  %v846_v3 = vmul.f32 %v844_v41, %v1612_v40  ;;  %v814_v16 = vrot.slane %v807_v52, 1 }
 0x10c   : > { %v720_v34 = vsel %vm326_vm3, %v718_v27, %v719_v14  ;;  %v722_v55 = vsel %vm326_vm3, %v719_v14, %v721_v33  ;;  %v827_v8 = vmul.f32 %v824_v42, %v1735_v11  ;;  %v813_v56 = vsel %vm326_vm3, %v811_v22, %v812_v4 }
 0x10d   : > { %v831_v53 = vrot.slane %v825_v60, 2  ;;  %v832_v15 = vrot.slane %v826_v62, 2  ;;  %v860_v21 = vmul.f32 %v857_v31, %v1735_v11  ;;  %v879_v54 = vmul.f32 %v877_v5, %v1612_v40 }
 0x10e   : > { %v834_v7 = vrot.slane %v827_v8, 2  ;;  %v884_v63 = vrot.slane %v878_v44, 2  ;;  %v880_v33 = vmul.f32 %v877_v5, %v1735_v11 }
 0x10f   : > { %599 = vrot.lane.b32.xlu1 %v596_v45, %s1983_s22  ;;  %670 = vrot.lane.b32.xlu0 %v667_v59, %s1982_s30  ;;  %v859_v45 = vmul.f32 %v857_v31, %v1612_v40  ;;  %v815_v59 = vsel %vm326_vm3, %v812_v4, %v814_v16  ;;  %v867_v14 = vrot.slane %v860_v21, 1 }
 0x110   : > { %v835_v27 = vsel %vm343_vm4, %v832_v15, %v834_v7  ;;  %v887_v46 = vrot.slane %v880_v33, 2 }
 0x111   : > { %v865_v25 = vrot.slane %v859_v45, 1 }
 0x113   : > { %672 = vrot.lane.b32.xlu1 %v669_v23, %s1982_s30  ;;  %690 = vrot.lane.b32.xlu0 %v687_v24, %s1982_s30  ;;  %v833_v23 = vsel %vm343_vm4, %v831_v53, %v832_v15  ;;  %v864_v24 = vrot.slane %v858_v26, 1 }
 0x115   : > { %v866_v51 = vsel %vm326_vm3, %v864_v24, %v865_v25 }
 0x117   : > { %692 = vrot.lane.b32.xlu1 %v689_v17, %s1982_s30  ;;  %723 = vrot.lane.b32.xlu0 %v720_v34, %s1983_s22  ;;  %v885_v17 = vrot.slane %v879_v54, 2  ;;  %v868_v34 = vsel %vm326_vm3, %v865_v25, %v867_v14 }
 0x119   : > { %v886_v1 = vsel %vm343_vm4, %v884_v63, %v885_v17  ;;  %v888_v38 = vsel %vm343_vm4, %v885_v17, %v887_v46 }
 0x11b   : > { %725 = vrot.lane.b32.xlu1 %v722_v55, %s1983_s22  ;;  %743 = vrot.lane.b32.xlu0 %v740_v43, %s1983_s22 }
 0x11f   : > { %745 = vrot.lane.b32.xlu1 %v742_v61, %s1983_s22  ;;  %849 = vrot.lane.b32.xlu0 %v845_v0, %s1983_s22 }
 0x123   : > { %851 = vrot.lane.b32.xlu1 %v846_v3, %s1983_s22  ;;  %816 = vrot.lane.b32.xlu0 %v813_v56, %s1982_s30 }
 0x127   : > { %818 = vrot.lane.b32.xlu1 %v815_v59, %s1982_s30  ;;  %836 = vrot.lane.b32.xlu0 %v833_v23, %s1982_s30 }
 0x12b   : > { %838 = vrot.lane.b32.xlu1 %v835_v27, %s1982_s30  ;;  %869 = vrot.lane.b32.xlu0 %v866_v51, %s1983_s22 }
 0x12f   : > { %871 = vrot.lane.b32.xlu1 %v868_v34, %s1983_s22  ;;  %889 = vrot.lane.b32.xlu0 %v886_v1, %s1983_s22 }
 0x133   : > { %891 = vrot.lane.b32.xlu1 %v888_v38, %s1983_s22  ;;  %s1018_s22 = sld [smem:[#allocation8 + $0x9]] }
 0x139   : > { %v462_v26 = vstv %s1018_s22 }
 0x13a   : > { %v463_v44 = vmul.f32 %v462_v26, %v1442_v20  ;;  %v464_v27 = vmul.f32 %v462_v26, %v1475_v28 }
 0x145   : > { %v359_v49 = vpop.permute.xlu0 %358 }
 0x146   : > { %v364_v22 = vadd.f32 %v359_v49, %v1694_v48 }
 0x149   : > { %v361_v55 = vpop.permute.xlu1 %360  ;;  %v412_v11 = vpop.permute.xlu0 %411 }
 0x14a   : > { %v365_v5 = vadd.f32 %v361_v55, %v1712_v12 }
 0x14d   : > { %v414_v41 = vpop.permute.xlu1 %413  ;;  %v505_v42 = vpop.permute.xlu0 %504 }
 0x151   : > { %v507_v43 = vpop.permute.xlu1 %506  ;;  %v558_v47 = vpop.permute.xlu0 %557 }
 0x155   : > { %v560_v2 = vpop.permute.xlu1 %559  ;;  %v1863_v57 = vpop.permute.xlu0 %650 }
 0x159   : > { %v1865_v0 = vpop.permute.xlu1 %652  ;;  %v1867_v52 = vpop.permute.xlu0 %703 }
 0x15d   : > { %v1869_v60 = vpop.permute.xlu1 %705  ;;  %v379_v61 = vpop.permute.xlu0 %378 }
 0x15e   : > { %v384_v4 = vadd.f32 %v379_v61, %v364_v22 }
 0x161   : > { %v381_v62 = vpop.permute.xlu1 %380  ;;  %v399_v31 = vpop.permute.xlu0 %398 }
 0x162   : > { %v404_v3 = vadd.f32 %v399_v31, %v384_v4  ;;  %v385_v16 = vadd.f32 %v381_v62, %v365_v5 }
 0x164   : > { %v417_v53 = vadd.f32 %v412_v11, %v404_v3 }
 0x165   : > { %v401_v8 = vpop.permute.xlu1 %400  ;;  %v432_v56 = vpop.permute.xlu0 %431 }
 0x166   : > { %v405_v15 = vadd.f32 %v401_v8, %v385_v16  ;;  %v437_v45 = vadd.f32 %v432_v56, %v417_v53 }
 0x168   : > { %v418_v59 = vadd.f32 %v414_v41, %v405_v15 }
 0x169   : > { %v434_v7 = vpop.permute.xlu1 %433  ;;  %v452_v21 = vpop.permute.xlu0 %451 }
 0x16a   : > { %v457_v48 = vadd.f32 %v452_v21, %v437_v45  ;;  %v438_v23 = vadd.f32 %v434_v7, %v418_v59 }
 0x16c   : > { %v465_v24 = vadd.f32 %v463_v44, %v457_v48 }
 0x16d   : > { %v454_v25 = vpop.permute.xlu1 %453  ;;  %v1874_v54 = vpop.permute.xlu0 %796 }
 0x16e   : > { %v481_v12 = vadd.f32 %v1706_v58, %v465_v24  ;;  %v458_v14 = vadd.f32 %v454_v25, %v438_v23 }
 0x170   : > { %v466_v51 = vadd.f32 %v464_v27, %v458_v14  ;;  %v497_v63 = vadd.f32 %v1723_v18, %v481_v12  ;;  %v608_v18 = vstv %s1027_s8 }
 0x171   : > { %v1879_v17 = vpop.permute.xlu1 %798  ;;  %v525_v33 = vpop.permute.xlu0 %524  ;;  %v610_v8 = vmul.f32 %v608_v18, %v1510_v35 }
 0x172   : > { %v482_v34 = vadd.f32 %v1715_v13, %v466_v51  ;;  %v510_v20 = vadd.f32 %v505_v42, %v497_v63  ;;  %v609_v13 = vmul.f32 %v608_v18, %v1488_v30 }
 0x174   : > { %v530_v1 = vadd.f32 %v525_v33, %v510_v20  ;;  %v498_v46 = vadd.f32 %v1728_v9, %v482_v34 }
 0x175   : > { %v527_v38 = vpop.permute.xlu1 %526  ;;  %v545_v49 = vpop.permute.xlu0 %544 }
 0x176   : > { %v511_v55 = vadd.f32 %v507_v43, %v498_v46  ;;  %v550_v58 = vadd.f32 %v545_v49, %v530_v1 }
 0x178   : > { %v531_v11 = vadd.f32 %v527_v38, %v511_v55  ;;  %v563_v28 = vadd.f32 %v558_v47, %v550_v58 }
 0x179   : > { %v547_v41 = vpop.permute.xlu1 %546  ;;  %v578_v61 = vpop.permute.xlu0 %577 }
 0x17a   : > { %v551_v22 = vadd.f32 %v547_v41, %v531_v11  ;;  %v583_v4 = vadd.f32 %v578_v61, %v563_v28 }
 0x17c   : > { %v564_v62 = vadd.f32 %v560_v2, %v551_v22 }
 0x17d   : > { %v580_v31 = vpop.permute.xlu1 %579  ;;  %v598_v5 = vpop.permute.xlu0 %597 }
 0x17e   : > { %v603_v42 = vadd.f32 %v598_v5, %v583_v4  ;;  %v584_v3 = vadd.f32 %v580_v31, %v564_v62 }
 0x180   : > { %v611_v16 = vadd.f32 %v609_v13, %v603_v42 }
 0x181   : > { %v600_v9 = vpop.permute.xlu1 %599  ;;  %v671_v53 = vpop.permute.xlu0 %670 }
 0x182   : > { %v627_v43 = vadd.f32 %v1747_v32, %v611_v16  ;;  %v604_v47 = vadd.f32 %v600_v9, %v584_v3 }
 0x184   : > { %v612_v56 = vadd.f32 %v610_v8, %v604_v47  ;;  %v643_v15 = vadd.f32 %v1756_v10, %v627_v43  ;;  %v754_v10 = vstv %s1036_s9 }
 0x185   : > { %v673_v26 = vpop.permute.xlu1 %672  ;;  %v691_v45 = vpop.permute.xlu0 %690  ;;  %v756_v34 = vmul.f32 %v754_v10, %v1612_v40 }
 0x186   : > { %v628_v2 = vadd.f32 %v1753_v37, %v612_v56  ;;  %v656_v30 = vadd.f32 %v1863_v57, %v643_v15  ;;  %v755_v57 = vmul.f32 %v754_v10, %v1610_v39 }
 0x188   : > { %v676_v59 = vadd.f32 %v671_v53, %v656_v30  ;;  %v644_v7 = vadd.f32 %v1765_v29, %v628_v2 }
 0x189   : > { %v693_v21 = vpop.permute.xlu1 %692  ;;  %v724_v44 = vpop.permute.xlu0 %723 }
 0x18a   : > { %v657_v32 = vadd.f32 %v1865_v0, %v644_v7  ;;  %v696_v48 = vadd.f32 %v691_v45, %v676_v59 }
 0x18c   : > { %v677_v35 = vadd.f32 %v673_v26, %v657_v32  ;;  %v709_v23 = vadd.f32 %v1867_v52, %v696_v48 }
 0x18d   : > { %v726_v24 = vpop.permute.xlu1 %725  ;;  %v744_v25 = vpop.permute.xlu0 %743 }
 0x18e   : > { %v697_v12 = vadd.f32 %v693_v21, %v677_v35  ;;  %v729_v27 = vadd.f32 %v724_v44, %v709_v23 }
 0x190   : > { %v710_v37 = vadd.f32 %v1869_v60, %v697_v12  ;;  %v749_v14 = vadd.f32 %v744_v25, %v729_v27 }
 0x191   : > { %v746_v51 = vpop.permute.xlu1 %745  ;;  %v850_v29 = vpop.permute.xlu0 %849 }
 0x192   : > { %v730_v63 = vadd.f32 %v726_v24, %v710_v37  ;;  %v757_v33 = vadd.f32 %v755_v57, %v749_v14 }
 0x194   : > { %v773_v0 = vadd.f32 %v1775_v19, %v757_v33  ;;  %v750_v52 = vadd.f32 %v746_v51, %v730_v63 }
 0x195   : > { %v852_v20 = vpop.permute.xlu1 %851  ;;  %v817_v1 = vpop.permute.xlu0 %816 }
 0x196   : > { %v758_v46 = vadd.f32 %v756_v34, %v750_v52  ;;  %v789_v38 = vadd.f32 %v1794_v36, %v773_v0 }
 0x198   : > { %v774_v60 = vadd.f32 %v1788_v50, %v758_v46  ;;  %v802_v39 = vadd.f32 %v1874_v54, %v789_v38 }
 0x199   : > { %v819_v49 = vpop.permute.xlu1 %818  ;;  %v837_v55 = vpop.permute.xlu0 %836 }
 0x19a   : > { %v822_v58 = vadd.f32 %v817_v1, %v802_v39  ;;  %v790_v11 = vadd.f32 %v1797_v6, %v774_v60 }
 0x19c   : > { %v803_v19 = vadd.f32 %v1879_v17, %v790_v11  ;;  %v842_v40 = vadd.f32 %v837_v55, %v822_v58 }
 0x19d   : > { %v839_v28 = vpop.permute.xlu1 %838  ;;  %v870_v41 = vpop.permute.xlu0 %869 }
 0x19e   : > { %v823_v61 = vadd.f32 %v819_v49, %v803_v19  ;;  %v855_v22 = vadd.f32 %v850_v29, %v842_v40 }
 0x1a0   : > { %v843_v18 = vadd.f32 %v839_v28, %v823_v61  ;;  %v875_v36 = vadd.f32 %v870_v41, %v855_v22 }
 0x1a1   : > { %v872_v50 = vpop.permute.xlu1 %871  ;;  %v890_v54 = vpop.permute.xlu0 %889 }
 0x1a2   : > { %v856_v4 = vadd.f32 %v852_v20, %v843_v18  ;;  %v895_v6 = vadd.f32 %v890_v54, %v875_v36 }
 0x1a4   : > { %v876_v17 = vadd.f32 %v872_v50, %v856_v4  ;;  %898 = vst.msk [vmem:[%s203_s11] sm:$0xff] %vm897_vm5, %v895_v6 }
 0x1a5   : > { %v892_v62 = vpop.permute.xlu1 %891 }
 0x1a6   : > { %v896_v31 = vadd.f32 %v892_v62, %v876_v17 }
 0x1a8   : > { %899 = vst.msk [vmem:[%s203_s11 + $0x8] sm:$0xff] %vm897_vm5, %v896_v31 }
 0x1a9   : > { %1181 = shalt.err (!%p1178_p11)
}
 0x1aa   : > { %s1182_s30 = scalar_lea.hbm %s1908_s27, 256  ;;  %s1186_s1 = scalar_lea.hbm %s1955_s3, 512 }
 0x1ab   : > { %p1183_p0 = scmp.ne.s32.totalorder %s1908_s27, %s1182_s30  ;;  %p1187_p6 = scmp.lt.u32.totalorder %s1908_s27, %s1955_s3 }
 0x1ac   : > { %p1188_p3 = scmp.lt.u32.totalorder %s1186_s1, %s1182_s30  ;;  %p1190_p5 = scmp.lt.u32.totalorder %s1182_s30, %s1908_s27 }
 0x1ad   : > { %p1184_p2 = pnand %p1183_p0, %p1984_p12 }
 0x1ae   : > { %p1189_p13 = por %p1188_p3, %p1187_p6 }
 0x1af   : > { %p1185_p7 = pneg %p1184_p2 }
 0x1b0   : > { %p1191_p8 = por %p1190_p5, %p1189_p13 }
 0x1b2   : > { %p1192_p9 = pnand %p1191_p8, %p1185_p7 }
 0x1b4   : > { %1195 = shalt.err (!%p1192_p9)
}
 0x1b5   : > { %s1249_s21 = smov 128   ;;  %s1250_s7 = smov 8  }
 0x1b6   : > { %1064 = dma.vmem_to_hbm [thread:$0]  (%p1984_p12), %s1903_s13, 256, %s1908_s27, %s901_s24, %s1249_s21, %s1249_s21, %s1250_s7  }
 0x1b7 PF: > { %s929_s5 = sand.u32 1, %s1226_s14   ;;  %p1985_p10 = scmp.ne.s32.totalorder %s1973_s26, 0 }
 0x1b8   : > { %p1986_p1 = scmp.ge.s32.totalorder %s1238_s17, 2  ;;  %s930_s22 = scalar_lea.sflag [#allocation6], %s929_s5 }
 0x1ba   : > { %p1075_p4 = pnand %p1986_p1, %p1985_p10 }
 0x1bc   : > { %1221 = dma.done.wait (!%p1075_p4), %s930_s22, 256  }
 0x1bd   : > { %1223 = vsyncadd (!%p1075_p4), %s930_s22, 4294967040  ;;  %s1987_s14 = sld [smem:[#allocation13_spill]]  ;;  %s1988_s15 = sld [smem:[#allocation14_spill]] }
 0x1be   : > { %s1989_s16 = sld [smem:[#allocation15_spill]]  ;;  %p18_p11 = scmp.ge.s32.totalorder %s1299_s19, 4  }
 0x1bf   : > { %s1990_s17 = smov %s1299_s19 }
 0x1c0   :  { %20 = sbr.rel (!%p18_p11) target bundleno = 10 (0xa), region = 88 }
 0x1c7   :  { %935 = vsyncpa [#allocation5], 1 }
 0x1c8   :  { %937 = vsyncpa [#allocation5 + $0x1], 1 }
 0x1c9   :  { %938 = vsyncpa [#allocation6], 1 }
 0x1ca   :  { %940 = vsyncpa [#allocation6 + $0x1], 1 }
 0x1cb   :  { %941 = vsyncpa [#allocation7], 1 }
 0x1cc   :  { %943 = vsyncpa [#allocation7 + $0x1], 1 }

</bundles_post_ra>
